<compile_context>
chip_gen: v6e
topology: v6e:2x2x1
jax: 0.10.0
libtpu: 0.0.40
codegen_flags: <defaults>
</compile_context>

<pallas_src>
import functools

import jax
import jax.numpy as jnp
from jax.experimental import pallas as pl
from jax.experimental.pallas import tpu as pltpu

NUM_CLASSES = 6
SCALE = 2.0


def _round_up(x, m):
    return (x + m - 1) // m * m


def _mae_loss_kernel(pred_ref, labels_ref, out_ref, acc_ref, *,
                     num_classes, n_actual, tile_n, num_tiles,
                     tiles_per_core, needs_mask):
    # pred_ref:   (C, TILE_N)   native dtype (cast to f32 in-kernel)
    # labels_ref: (1, TILE_N)   int32 (padded/garbage columns masked below)
    # out_ref:    (1, 1, 128)   f32 per-core partial sum (written on last step)
    # acc_ref:    (1, TILE_N)   f32 lane-wide running sum of (1 - p_true)
    c = pl.program_id(0)          # partial-sum / core index ("parallel")
    i = pl.program_id(1)          # tile index within this core ("arbitrary")

    @pl.when(i == 0)
    def _init():
        acc_ref[...] = jnp.zeros_like(acc_ref)

    x = pred_ref[...].astype(jnp.float32)                 # (C, TILE_N)
    lab = labels_ref[...]                                 # (1, TILE_N) int32

    # Full-block 2D class reductions: max/sum over the sublane (class) axis go
    # to the XLU; exp stays lane-dense on the EUP at 6/8 sublane utilization.
    m = jnp.max(x, axis=0, keepdims=True)                 # (1, TILE_N)
    e = jnp.exp(x - m)                                    # (C, TILE_N)
    denom = jnp.sum(e, axis=0, keepdims=True)             # (1, TILE_N)
    cls = jax.lax.broadcasted_iota(jnp.int32, (num_classes, tile_n), 0)
    numer = jnp.sum(jnp.where(cls == lab, e, 0.0), axis=0, keepdims=True)
    p_true = numer / denom                                # exact divide
    contrib = 1.0 - p_true                                # (1, TILE_N)

    if needs_mask:
        # Only "edge" tiles (the ragged last real tile, wrapper 128-pad
        # columns, or duplicated clamp-tiles of the per-core split) can hold
        # columns >= n_actual.  Gate the iota/compare/select to those tiles.
        t = c * tiles_per_core + i          # unclamped global tile index
        is_edge = t >= num_tiles - 1

        @pl.when(jnp.logical_not(is_edge))
        def _acc_fast():
            acc_ref[...] += contrib

        @pl.when(is_edge)
        def _acc_masked():
            col = t * tile_n + jax.lax.broadcasted_iota(
                jnp.int32, (1, tile_n), 1)
            # Select (not multiplicative masking): garbage columns may be NaN.
            acc_ref[...] += jnp.where(col < n_actual, contrib, 0.0)
    else:
        acc_ref[...] += contrib

    @pl.when(i == pl.num_programs(1) - 1)
    def _finalize():
        total = jnp.sum(acc_ref[...])                     # single XLU reduce
        out_ref[...] = jnp.full((1, 1, 128), total, jnp.float32)


def mae_loss(pred, labels, num_classes=NUM_CLASSES, scale=SCALE,
             tile_n=65536, num_partials=2, class_major=False):
    """pred: (N, C) logits (or (C, N) if class_major=True), labels: (N,) int.

    Returns scale * mean(1 - softmax(pred)[label]) as a f32 scalar.
    """
    if class_major:
        c, n = pred.shape
        pred_t = pred
    else:
        n, c = pred.shape
        # TODO(synk): have the producer emit class-major (C, N) logits (fuse
        # this transpose into the preceding matmul's output layout) so this
        # extra HBM pass disappears — biggest remaining lever for this
        # memory-bound op.
        pred_t = jnp.transpose(pred)
    assert c == num_classes
    assert labels.shape == (n,)

    labels_i = labels.astype(jnp.int32)

    # Align the batch axis to the 128-lane granularity.  For 128-aligned N
    # (the common case) this is a no-op; otherwise a small one-time pad.
    n_pad = _round_up(n, 128)
    if n_pad != n:
        pred_t = jnp.pad(pred_t, ((0, 0), (0, n_pad - n)))
        labels_i = jnp.pad(labels_i, (0, n_pad - n), constant_values=-1)
    labels2d = labels_i.reshape(1, n_pad)

    # Big lane-dense tiles to amortize the ~0.35us/step pipeline overhead;
    # tile_n=64K keeps the double-buffered pred+labels+acc footprint ~10 MiB,
    # well inside the 32 MiB limit (safe on v7x's 64 MiB VMEM).
    tile_n = max(128, (int(tile_n) // 128) * 128)
    tile_n = min(tile_n, n_pad)
    num_tiles = pl.cdiv(n_pad, tile_n)

    # Split the tile axis across TensorCores (2 on v7x; a harmless serial
    # outer loop of the same total work on v5e/v6e).  Each core accumulates
    # its own partial sum; the mean + scale happen in the wrapper.
    num_partials = max(1, min(int(num_partials), num_tiles))
    tiles_per_core = pl.cdiv(num_tiles, num_partials)
    needs_mask = (num_tiles * tile_n != n) or \
                 (num_partials * tiles_per_core != num_tiles)

    def _in_map(c_idx, i_idx):
        # Clamp so the (rare) duplicated tail tile of an uneven per-core split
        # stays in bounds; its contribution is masked to zero in the kernel.
        t = jnp.minimum(c_idx * tiles_per_core + i_idx, num_tiles - 1)
        return (0, t)

    kernel = functools.partial(
        _mae_loss_kernel,
        num_classes=num_classes, n_actual=n, tile_n=tile_n,
        num_tiles=num_tiles, tiles_per_core=tiles_per_core,
        needs_mask=needs_mask)

    partials = pl.pallas_call(
        kernel,
        out_shape=jax.ShapeDtypeStruct((num_partials, 1, 128), jnp.float32),
        grid_spec=pltpu.PrefetchScalarGridSpec(
            num_scalar_prefetch=0,
            grid=(num_partials, tiles_per_core),
            in_specs=[
                pl.BlockSpec((num_classes, tile_n), _in_map),
                pl.BlockSpec((1, tile_n), _in_map),
            ],
            out_specs=pl.BlockSpec((1, 1, 128),
                                   lambda c_idx, i_idx: (c_idx, 0, 0)),
            scratch_shapes=[pltpu.VMEM((1, tile_n), jnp.float32)],
        ),
        compiler_params=pltpu.CompilerParams(
            dimension_semantics=("parallel", "arbitrary"),
            vmem_limit_bytes=32 * 1024 * 1024,
        ),
    )(pred_t, labels2d)

    total = jnp.sum(partials[:, 0, 0])
    return jnp.float32(scale) * (total / jnp.float32(n))


def mae_loss_ref(pred, labels, num_classes=NUM_CLASSES, scale=SCALE):
    p = jax.nn.softmax(pred.astype(jnp.float32), axis=1)
    oh = jax.nn.one_hot(labels, num_classes, dtype=jnp.float32)
    loss = 1.0 - jnp.sum(oh * p, axis=1)
    return scale * jnp.mean(loss)


if __name__ == "__main__":
    key = jax.random.PRNGKey(0)
    k1, k2, k3, k4 = jax.random.split(key, 4)

    # Small shape consistent with the module: batch=8, classes=6.
    N = 8
    pred = jax.random.normal(k1, (N, NUM_CLASSES), dtype=jnp.float32)
    labels = jax.random.randint(k2, (N,), 0, NUM_CLASSES, dtype=jnp.int32)

    out = mae_loss(pred, labels)
    jax.block_until_ready(out)
    ref = mae_loss_ref(pred, labels)
    assert jnp.allclose(out, ref, rtol=1e-4, atol=1e-6), (out, ref)

    # Second check: ragged N, multi-tile grid, 2-way per-core partial sums.
    N2 = 300
    pred2 = jax.random.normal(k3, (N2, NUM_CLASSES), dtype=jnp.float32)
    labels2 = jax.random.randint(k4, (N2,), 0, NUM_CLASSES, dtype=jnp.int32)
    out2 = mae_loss(pred2, labels2, tile_n=128, num_partials=2)
    jax.block_until_ready(out2)
    ref2 = mae_loss_ref(pred2, labels2)
    assert jnp.allclose(out2, ref2, rtol=1e-4, atol=1e-6), (out2, ref2)

    print("KERNEL_OK")
</pallas_src>

<mosaic_0001>
module attributes {stable_mosaic.version = 11 : i64} {
  func.func @_mae_loss_kernel(%arg0: i32, %arg1: i32, %arg2: memref<6x128xf32, #tpu.memory_space<vmem>>, %arg3: memref<1x128xi32, #tpu.memory_space<vmem>>, %arg4: memref<1x1x128xf32, #tpu.memory_space<vmem>>, %arg5: memref<1x128xf32, #tpu.memory_space<vmem>>) attributes {dimension_semantics = [#tpu.dimension_semantics<parallel>, #tpu.dimension_semantics<arbitrary>], iteration_bounds = array<i64: 1, 1>, scalar_prefetch = 0 : i64, scratch_operands = 1 : i64, tpu.core_type = #tpu.core_type<tc>, window_params = [{transform_indices = @transform_0, window_bounds = array<i64: 6, 128>}, {transform_indices = @transform_1, window_bounds = array<i64: 1, 128>}, {transform_indices = @transform_2, window_bounds = array<i64: 1, 1, 128>}]} {
    %c0_i32 = arith.constant 0 : i32
    %0 = arith.cmpi eq, %arg1, %c0_i32 : i32
    %1 = arith.extui %0 : i1 to i32
    %c0_i32_0 = arith.constant 0 : i32
    %2 = arith.cmpi ne, %1, %c0_i32_0 : i32
    scf.if %2 {
      %cst_13 = arith.constant 0.000000e+00 : f32
      %33 = vector.broadcast %cst_13 : f32 to vector<1x128xf32>
      %c0_14 = arith.constant 0 : index
      %c0_15 = arith.constant 0 : index
      %34 = vector.load %arg5[%c0_14, %c0_15] : memref<1x128xf32, #tpu.memory_space<vmem>>, vector<1x128xf32>
      tpu.vector_store %arg5[%c0_14, %c0_15], %33 {strides = array<i32>} : memref<1x128xf32, #tpu.memory_space<vmem>>, vector<1x128xf32>,
    } else {
    }
    %c0 = arith.constant 0 : index
    %c0_1 = arith.constant 0 : index
    %3 = vector.load %arg2[%c0, %c0_1] : memref<6x128xf32, #tpu.memory_space<vmem>>, vector<6x128xf32>
    %c0_2 = arith.constant 0 : index
    %c0_3 = arith.constant 0 : index
    %4 = vector.load %arg3[%c0_2, %c0_3] : memref<1x128xi32, #tpu.memory_space<vmem>>, vector<1x128xi32>
    %cst = arith.constant dense<0xFF800000> : vector<128xf32>
    %5 = vector.multi_reduction <maximumf>, %3, %cst [0] : vector<6x128xf32> to vector<128xf32>
    %6 = vector.shape_cast %5 : vector<128xf32> to vector<1x128xf32>
    %7 = vector.broadcast %6 : vector<1x128xf32> to vector<6x128xf32>
    %8 = arith.subf %3, %7 : vector<6x128xf32>
    %9 = math.exp %8 : vector<6x128xf32>
    %cst_4 = arith.constant dense<0.000000e+00> : vector<128xf32>
    %10 = vector.multi_reduction <add>, %9, %cst_4 [0] : vector<6x128xf32> to vector<128xf32>
    %11 = vector.shape_cast %10 : vector<128xf32> to vector<1x128xf32>
    %12 = tpu.iota {dimensions = array<i32: 0>} : vector<6x128xi32>
    %13 = vector.broadcast %4 : vector<1x128xi32> to vector<6x128xi32>
    %14 = arith.cmpi eq, %12, %13 : vector<6x128xi32>
    %cst_5 = arith.constant 0.000000e+00 : f32
    %15 = vector.broadcast %cst_5 : f32 to vector<6x128xf32>
    %16 = arith.select %14, %9, %15 : vector<6x128xi1>, vector<6x128xf32>
    %cst_6 = arith.constant dense<0.000000e+00> : vector<128xf32>
    %17 = vector.multi_reduction <add>, %16, %cst_6 [0] : vector<6x128xf32> to vector<128xf32>
    %18 = vector.shape_cast %17 : vector<128xf32> to vector<1x128xf32>
    %19 = arith.divf %18, %11 : vector<1x128xf32>
    %cst_7 = arith.constant 1.000000e+00 : f32
    %20 = vector.broadcast %cst_7 : f32 to vector<1x128xf32>
    %21 = arith.subf %20, %19 : vector<1x128xf32>
    %c1_i32 = arith.constant 1 : i32
    %22 = arith.muli %arg0, %c1_i32 : i32
    %23 = arith.addi %22, %arg1 : i32
    %c0_i32_8 = arith.constant 0 : i32
    %24 = arith.cmpi sge, %23, %c0_i32_8 : i32
    %true = arith.constant true
    %25 = arith.xori %24, %true : i1
    %26 = arith.extui %25 : i1 to i32
    %c0_i32_9 = arith.constant 0 : i32
    %27 = arith.cmpi ne, %26, %c0_i32_9 : i32
    scf.if %27 {
      %c0_13 = arith.constant 0 : index
      %c0_14 = arith.constant 0 : index
      %33 = vector.load %arg5[%c0_13, %c0_14] : memref<1x128xf32, #tpu.memory_space<vmem>>, vector<1x128xf32>
      %34 = arith.addf %33, %21 : vector<1x128xf32>
      %c0_15 = arith.constant 0 : index
      %c0_16 = arith.constant 0 : index
      %35 = vector.load %arg5[%c0_15, %c0_16] : memref<1x128xf32, #tpu.memory_space<vmem>>, vector<1x128xf32>
      tpu.vector_store %arg5[%c0_15, %c0_16], %34 {strides = array<i32>} : memref<1x128xf32, #tpu.memory_space<vmem>>, vector<1x128xf32>,
    } else {
    }
    %28 = arith.extui %24 : i1 to i32
    %c0_i32_10 = arith.constant 0 : i32
    %29 = arith.cmpi ne, %28, %c0_i32_10 : i32
    scf.if %29 {
      %c128_i32 = arith.constant 128 : i32
      %33 = arith.muli %23, %c128_i32 : i32
      %34 = tpu.iota {dimensions = array<i32: 1>} : vector<1x128xi32>
      %35 = vector.broadcast %33 : i32 to vector<1x128xi32>
      %36 = arith.addi %35, %34 : vector<1x128xi32>
      %c0_13 = arith.constant 0 : index
      %c0_14 = arith.constant 0 : index
      %37 = vector.load %arg5[%c0_13, %c0_14] : memref<1x128xf32, #tpu.memory_space<vmem>>, vector<1x128xf32>
      %c8_i32 = arith.constant 8 : i32
      %38 = vector.broadcast %c8_i32 : i32 to vector<1x128xi32>
      %39 = arith.cmpi slt, %36, %38 : vector<1x128xi32>
      %cst_15 = arith.constant 0.000000e+00 : f32
      %40 = vector.broadcast %cst_15 : f32 to vector<1x128xf32>
      %41 = arith.select %39, %21, %40 : vector<1x128xi1>, vector<1x128xf32>
      %42 = arith.addf %37, %41 : vector<1x128xf32>
      %c0_16 = arith.constant 0 : index
      %c0_17 = arith.constant 0 : index
      %43 = vector.load %arg5[%c0_16, %c0_17] : memref<1x128xf32, #tpu.memory_space<vmem>>, vector<1x128xf32>
      tpu.vector_store %arg5[%c0_16, %c0_17], %42 {strides = array<i32>} : memref<1x128xf32, #tpu.memory_space<vmem>>, vector<1x128xf32>,
    } else {
    }
    %c0_i32_11 = arith.constant 0 : i32
    %30 = arith.cmpi eq, %arg1, %c0_i32_11 : i32
    %31 = arith.extui %30 : i1 to i32
    %c0_i32_12 = arith.constant 0 : i32
    %32 = arith.cmpi ne, %31, %c0_i32_12 : i32
    scf.if %32 {
      %c0_13 = arith.constant 0 : index
      %c0_14 = arith.constant 0 : index
      %33 = vector.load %arg5[%c0_13, %c0_14] : memref<1x128xf32, #tpu.memory_space<vmem>>, vector<1x128xf32>
      %34 = vector.shape_cast %33 : vector<1x128xf32> to vector<1x1x128xf32>
      %cst_15 = arith.constant dense<0.000000e+00> : vector<1xf32>
      %35 = vector.multi_reduction <add>, %34, %cst_15 [1, 2] : vector<1x1x128xf32> to vector<1xf32>
      %36 = vector.shape_cast %35 : vector<1xf32> to vector<1x1x1xf32>
      %37 = vector.extract %36[0, 0, 0] : f32 from vector<1x1x1xf32>
      %38 = vector.broadcast %37 : f32 to vector<1x1x128xf32>
      %c0_16 = arith.constant 0 : index
      %c0_17 = arith.constant 0 : index
      %c0_18 = arith.constant 0 : index
      %39 = vector.load %arg4[%c0_16, %c0_17, %c0_18] : memref<1x1x128xf32, #tpu.memory_space<vmem>>, vector<1x1x128xf32>
      tpu.vector_store %arg4[%c0_16, %c0_17, %c0_18], %38 {strides = array<i32>} : memref<1x1x128xf32, #tpu.memory_space<vmem>>, vector<1x1x128xf32>,
    } else {
    }
    return
  }
  func.func @transform_0(%arg0: i32, %arg1: i32) -> (i32, i32) {
    %c1_i32 = arith.constant 1 : i32
    %0 = arith.muli %arg0, %c1_i32 : i32
    %1 = arith.addi %0, %arg1 : i32
    %c0_i32 = arith.constant 0 : i32
    %2 = arith.minsi %1, %c0_i32 : i32
    %c0_i32_0 = arith.constant 0 : i32
    %c0_i32_1 = arith.constant 0 : i32
    return %c0_i32_0, %2 : i32, i32
  }
  func.func @transform_1(%arg0: i32, %arg1: i32) -> (i32, i32) {
    %c1_i32 = arith.constant 1 : i32
    %0 = arith.muli %arg0, %c1_i32 : i32
    %1 = arith.addi %0, %arg1 : i32
    %c0_i32 = arith.constant 0 : i32
    %2 = arith.minsi %1, %c0_i32 : i32
    %c0_i32_0 = arith.constant 0 : i32
    %c0_i32_1 = arith.constant 0 : i32
    return %c0_i32_0, %2 : i32, i32
  }
  func.func @transform_2(%arg0: i32, %arg1: i32) -> (i32, i32, i32) {
    %c0_i32 = arith.constant 0 : i32
    %c0_i32_0 = arith.constant 0 : i32
    %c0_i32_1 = arith.constant 0 : i32
    return %arg0, %c0_i32, %c0_i32_0 : i32, i32, i32
  }
}

</mosaic_0001>

<bundles_post_ra>
// kernel: tpu_custom_call.1
= control target key start
LH: loop header
LB: loop body
LE: loop exit
PB: predicated region body
PF: predicated region fallthrough
CT: control target
= control target key end

     0   :  { %7 = vsyncpa [#allocation4], 0  ;;  %s242_s0 = inlined_call_operand.hbm [shape: f32[6,128], index: 0, kind: input, shape index: {}]   ;;  %s243_s1 = inlined_call_operand.vmem [shape: s32[1,128], index: 1, kind: input, shape index: {}]   ;;  %s244_s2 = inlined_call_operand.hbm [shape: f32[1,1,128], index: 2, kind: output, shape index: {}]  }
   0x1   :  { %8 = vsyncpa [#allocation5], 0  ;;  %s212_s9 = smov [#allocation3]  }
   0x2   :  { %s20_s10 = sshll.u32 %s212_s9, 4  ;;  %s21_s10 = int_to_ptr.vmem [resolvable:$true] %s20_s10 }
   0x3   :  { %s176_s11 = scalar_lea.vmem %s21_s10, 128  ;;  %p181_p1 = scmp.lt.s32.totalorder %s21_s10, %s21_s10 }
   0x4   :  { %p177_p0 = scmp.ne.s32.totalorder %s21_s10, %s176_s11  ;;  %p182_p2 = scmp.lt.s32.totalorder %s176_s11, %s176_s11 }
   0x6   :  { %p183_p3 = por %p182_p2, %p181_p1 }
   0x8   :  { %p184_p4 = pnand %p183_p3, %p177_p0 }
   0xa   :  { %187 = shalt.err (!%p184_p4)
}
   0xb   :  { %23 = dma.hbm_to_vmem [thread:$0]  %s242_s0, 128, %s21_s10, [#allocation4]  }
   0xc   :  { %208 = dma.done.wait [#allocation4], 128  }
   0xd   :  { %209 = vsyncadd [#allocation4], 4294967168  ;;  %v213_v0 = vmov 0.0   ;;  %vm63_vm0 = vcmask 1045504   ;;  %v61_v1 = vld [vmem:[#allocation3] sm:$0x3f]  ;;  %v81_v11 = vlaneseq }
   0xe   :  { %60 = vst [vmem:[#allocation2] sm:$0x1] %v213_v0  ;;  %v64_v2 = vsel %vm63_vm0, %v61_v1, -inf  ;;  %v158_v13 = vld [vmem:[%s243_s1] ss:$0 sm:$0xff]  ;;  %vm125_vm3 = vcmask 1040384  }
   0xf   :  { %v65_v3 = vrot.slane %v64_v2, 4  ;;  %v82_v12 = vshrl.u32 %v81_v11, 7  ;;  %v113_v30 = vand.u32 127, %v81_v11  ;;  %s214_s1 = smov [#allocation6]  }
  0x10   :  { %s144_s15 = sshll.u32 %s214_s1, 4  ;;  %s145_s15 = int_to_ptr.vmem [resolvable:$true] %s144_s15 }
  0x11   :  { %v66_v4 = vmax.f32 %v64_v2, %v65_v3  ;;  %vm87_vm1 = vcmp.eq.s32.totalorder %v82_v12, %v158_v13  ;;  %vm117_vm2 = vcmp.lt.s32.totalorder %v113_v30, 8  ;;  %s188_s17 = scalar_lea.vmem %s145_s15, 16  ;;  %s192_s18 = scalar_lea.vmem %s145_s15, 32 }
  0x12   :  { %p189_p5 = scmp.ne.s32.totalorder %s145_s15, %s188_s17  ;;  %p193_p6 = scmp.lt.s32.totalorder %s145_s15, %s145_s15 }
  0x13   :  { %v67_v5 = vrot.slane %v66_v4, 2  ;;  %p194_p7 = scmp.lt.s32.totalorder %s192_s18, %s188_s17 }
  0x15   :  { %v68_v6 = vmax.f32 %v66_v4, %v67_v5  ;;  %v116_v34 = vld [vmem:[#allocation2] sm:$0x1]  ;;  %p195_p8 = por %p194_p7, %p193_p6 }
  0x17   :  { %v69_v7 = vrot.slane %v68_v6, 1  ;;  %p196_p9 = pnand %p195_p8, %p189_p5 }
  0x19   :  { %v70_v8 = vmax.f32 %v68_v6, %v69_v7 }
  0x1b   :  { %v71_v9 = vsub.f32 %v61_v1, %v70_v8 }
  0x1d   :  { %v72_v10 = vmul.f32 1.442695, %v71_v9 }
  0x1f   :  { %164 = vpow2.f32 %v72_v10 }
  0x2c   :  { %v165_v14 = vpop.eup %164 }
  0x2d   :  { %v74_v15 = vsel %vm63_vm0, %v165_v14, 0.0  ;;  %v88_v16 = vsel %vm87_vm1, %v165_v14, 0.0 }
  0x2e   :  { %v75_v17 = vrot.slane %v74_v15, 4  ;;  %v89_v18 = vsel %vm63_vm0, %v88_v16, 0.0 }
  0x2f   :  { %v90_v20 = vrot.slane %v89_v18, 4 }
  0x30   :  { %v76_v19 = vadd.f32 %v75_v17, %v74_v15 }
  0x31   :  { %v91_v23 = vadd.f32 %v90_v20, %v89_v18 }
  0x32   :  { %v77_v21 = vrot.slane %v76_v19, 2 }
  0x33   :  { %v92_v26 = vrot.slane %v91_v23, 2 }
  0x34   :  { %v78_v22 = vadd.f32 %v77_v21, %v76_v19 }
  0x35   :  { %v93_v27 = vadd.f32 %v92_v26, %v91_v23 }
  0x36   :  { %v79_v24 = vrot.slane %v78_v22, 1 }
  0x37   :  { %v94_v28 = vrot.slane %v93_v27, 1 }
  0x38   :  { %v80_v25 = vadd.f32 %v79_v24, %v78_v22 }
  0x39   :  { %v95_v29 = vadd.f32 %v94_v28, %v93_v27 }
  0x3a   :  { %166 = vrcp.f32 %v80_v25 }
  0x47   :  { %v167_v31 = vpop.eup %166 }
  0x48   :  { %v97_v32 = vmul.f32 %v167_v31, %v95_v29 }
  0x4a   :  { %v98_v33 = vsub.f32 1.0, %v97_v32 }
  0x4c   :  { %v118_v35 = vsel %vm117_vm2, %v98_v33, 0.0 }
  0x4d   :  { %v119_v36 = vadd.f32 %v118_v35, %v116_v34 }
  0x4f   :  { %120 = vst [vmem:[#allocation2] sm:$0x1] %v119_v36 }
  0x56   :  { %v124_v37 = vld [vmem:[#allocation2] sm:$0x1] }
  0x57   :  { %v126_v38 = vsel %vm125_vm3, %v124_v37, 0.0 }
  0x58   :  { %127 = vadd.xlane.f32.xlu0 %v126_v38 }
  0xe1   :  { %v128_v39 = vpop.xlane.xlu0 %127 }
  0xe2   :  { %v129_v40 = vrot.slane %v128_v39, 4 }
  0xe4   :  { %v130_v41 = vadd.f32 %v129_v40, %v128_v39 }
  0xe6   :  { %v131_v42 = vrot.slane %v130_v41, 2 }
  0xe8   :  { %v132_v43 = vadd.f32 %v131_v42, %v130_v41 }
  0xea   :  { %v133_v44 = vrot.slane %v132_v43, 1 }
  0xec   :  { %v134_v45 = vadd.f32 %v133_v44, %v132_v43 }
  0xee   :  { %159 = vpush %v134_v45 }
 0x11f   :  { %s160_s16 = spop %159 }
 0x120   :  { %v136_v46 = vstv %s160_s16 }
 0x121   :  { %137 = vst [vmem:[#allocation6] sm:$0x1] %v136_v46 }
 0x122   :  { %199 = shalt.err (!%p196_p9)
}
 0x123   :  { %147 = dma.vmem_to_hbm [thread:$0]  %s145_s15, 16, %s244_s2, [#allocation5]  }
 0x124   :  { %210 = dma.done.wait [#allocation5], 16  }
 0x125   :  { %211 = vsyncadd [#allocation5], 4294967280 }
 0x126   :  { %151 = vsyncpa [#allocation4], 1 }
 0x127   :  { %152 = vsyncpa [#allocation5], 1 }

</bundles_post_ra>
